<compile_context>
chip_gen: v6e
topology: v6e:2x2x1
jax: 0.10.0
libtpu: 0.0.40
codegen_flags: <defaults>
</compile_context>

<pallas_src>
import functools

import jax
import jax.numpy as jnp
from jax.experimental import pallas as pl
from jax.experimental.pallas import tpu as pltpu


DEFAULT_TILE_ROWS = 8192              # 8192 x 128 x 4B = 4 MiB per f32 block
NUM_SPLITS = 2                        # leading "parallel" axis (v7x: 2 TCs/chip)
VMEM_LIMIT_BYTES = 32 * 1024 * 1024   # legal on v5e/v6e/v7x, fits 2x2x4 MiB bufs


def _mse_partial_kernel(pred_ref, gt_ref, out_ref, *,
                        steps, tile_rows, n_rows, full_blocks, needs_mask):
    c = pl.program_id(0)              # core-split index ("parallel")
    i = pl.program_id(1)              # streaming step   ("arbitrary")

    # The (8, 128) output block is resident across the inner axis -> accumulator.
    @pl.when(i == 0)
    def _init():
        out_ref[...] = jnp.zeros_like(out_ref)

    p = pred_ref[...].astype(jnp.float32)
    g = gt_ref[...].astype(jnp.float32)
    diff = p - g
    sq = diff * diff

    b = c * steps + i                 # unclamped global block index

    def _accum(vals):
        if tile_rows % 8 == 0:
            # (tile, 128) -> (tile//8, 8, 128): layout-preserving reshape, then
            # pure VALU vreg adds down to a single (8, 128) vreg.
            out_ref[...] += jnp.sum(vals.reshape(-1, 8, 128), axis=0)
        else:
            # Small full-extent block: lane-wise partial into sublane row 0.
            out_ref[0:1, :] += jnp.sum(vals, axis=0, keepdims=True)

    if needs_mask:
        # Only trailing blocks (ragged last block / clamped overhang of the
        # second split) pay for the iota+compare+select.
        @pl.when(b < full_blocks)
        def _full():
            _accum(sq)

        @pl.when(b >= full_blocks)
        def _ragged():
            row = jax.lax.broadcasted_iota(jnp.int32, sq.shape, 0) + b * tile_rows
            _accum(jnp.where(row < n_rows, sq, 0.0))
    else:
        _accum(sq)


def custom_loss(predicted, ground_truth, layer_output=None, *,
                alpha=1e-5, eigen=True, tile_rows=DEFAULT_TILE_ROWS):
    """JAX/Pallas equivalent of custum_loss.forward (Utils.Eigen == eigen)."""
    assert predicted.shape == ground_truth.shape

    n_true = predicted.size
    pred_flat = predicted.reshape(-1)
    gt_flat = ground_truth.reshape(-1)

    # Ragged (<128 element) tail handled in the wrapper: no full-tensor
    # jnp.pad copy of either input on the hot path.
    n_aligned = (n_true // 128) * 128
    tail_sum = jnp.float32(0.0)
    if n_aligned != n_true:
        pt = pred_flat[n_aligned:].astype(jnp.float32)
        gt_tail = gt_flat[n_aligned:].astype(jnp.float32)
        tail_sum = jnp.sum((pt - gt_tail) ** 2)

    if n_aligned == 0:
        sq_sum = tail_sum                       # tiny input: no kernel needed
    else:
        p2 = pred_flat[:n_aligned].reshape(-1, 128)
        g2 = gt_flat[:n_aligned].reshape(-1, 128)
        n_rows = p2.shape[0]

        # Full-extent block for small inputs (always a legal tile, any dtype);
        # otherwise tile_rows (multiple of 32 -> legal for f32/bf16/int8).
        tile = n_rows if n_rows < tile_rows else tile_rows
        n_blocks = pl.cdiv(n_rows, tile)
        steps = pl.cdiv(n_blocks, NUM_SPLITS)
        full_blocks = n_rows // tile
        needs_mask = (NUM_SPLITS * steps * tile) != n_rows

        def in_map(c, i):
            # Clamp so the second split's overhang never indexes out of bounds;
            # those iterations are fully masked in-kernel, and because the
            # clamped index repeats, Pallas skips the duplicate DMA.
            return (jnp.minimum(c * steps + i, n_blocks - 1), 0)

        itemsize = jnp.dtype(predicted.dtype).itemsize
        cost = pl.CostEstimate(
            flops=3 * n_aligned,
            bytes_accessed=2 * n_aligned * itemsize + 8 * NUM_SPLITS * 128 * 4,
            transcendentals=0)

        kernel = functools.partial(
            _mse_partial_kernel,
            steps=steps, tile_rows=tile, n_rows=n_rows,
            full_blocks=full_blocks, needs_mask=needs_mask)

        # Output: one (8, 128) f32 accumulator slab per core split, summed in
        # the wrapper.  Block last-two dims are (8, 128) -> always legal.
        partials = pl.pallas_call(
            kernel,
            out_shape=jax.ShapeDtypeStruct((8, NUM_SPLITS * 128), jnp.float32),
            grid=(NUM_SPLITS, steps),
            in_specs=[pl.BlockSpec((tile, 128), in_map),
                      pl.BlockSpec((tile, 128), in_map)],
            out_specs=pl.BlockSpec((8, 128), lambda c, i: (0, c)),
            compiler_params=pltpu.CompilerParams(
                dimension_semantics=("parallel", "arbitrary"),
                vmem_limit_bytes=VMEM_LIMIT_BYTES),
            cost_estimate=cost,
        )(p2, g2)

        sq_sum = jnp.sum(partials) + tail_sum

    loss = sq_sum / jnp.float32(n_true)

    if eigen:
        assert layer_output is not None
        assert layer_output.ndim == 2 and layer_output.shape[0] == layer_output.shape[1]
        n_eig = layer_output.shape[0]
        # Re(mean(eigvals(L))) == trace(L) / n for real square L (exact).
        trace = jnp.trace(layer_output).astype(jnp.float32)
        loss = loss + jnp.float32(alpha) * (trace / jnp.float32(n_eig))
    return loss


if __name__ == "__main__":
    key = jax.random.PRNGKey(0)
    k1, k2, k3, k4, k5 = jax.random.split(key, 5)

    # Small shapes consistent with the forward signature.
    predicted = jax.random.normal(k1, (2, 4, 16, 16), dtype=jnp.float32)
    ground_truth = jax.random.normal(k2, (2, 4, 16, 16), dtype=jnp.float32)
    layer_output = jax.random.normal(k3, (32, 32), dtype=jnp.float32)  # square

    # Eigen path (Utils.Eigen == True).
    loss = custom_loss(predicted, ground_truth, layer_output,
                       alpha=1e-5, eigen=True)
    jax.block_until_ready(loss)
    ref = jnp.mean((predicted - ground_truth) ** 2) + 1e-5 * (
        jnp.trace(layer_output) / layer_output.shape[0])
    assert jnp.allclose(loss, ref, rtol=1e-5, atol=1e-6), (loss, ref)

    # MSE-only path (Utils.Eigen == False): layer_output never enters the call.
    loss_mse = custom_loss(predicted, ground_truth, eigen=False)
    jax.block_until_ready(loss_mse)
    ref_mse = jnp.mean((predicted - ground_truth) ** 2)
    assert jnp.allclose(loss_mse, ref_mse, rtol=1e-5, atol=1e-6), (loss_mse, ref_mse)

    # Multi-block path: exercises the 2-way core split with multiple blocks.
    loss_mb = custom_loss(predicted, ground_truth, layer_output,
                          alpha=1e-5, eigen=True, tile_rows=8)
    jax.block_until_ready(loss_mb)
    assert jnp.allclose(loss_mb, ref, rtol=1e-5, atol=1e-6), (loss_mb, ref)

    # Ragged size + bf16 inputs: exercises the wrapper-side tail and the
    # full-extent small-block path.
    p_r = jax.random.normal(k4, (3, 5, 7, 11), dtype=jnp.bfloat16)
    g_r = jax.random.normal(k5, (3, 5, 7, 11), dtype=jnp.bfloat16)
    loss_r = custom_loss(p_r, g_r, layer_output, alpha=1e-5, eigen=True)
    jax.block_until_ready(loss_r)
    ref_r = jnp.mean((p_r.astype(jnp.float32) - g_r.astype(jnp.float32)) ** 2) + 1e-5 * (
        jnp.trace(layer_output) / layer_output.shape[0])
    assert jnp.allclose(loss_r, ref_r, rtol=1e-4, atol=1e-5), (loss_r, ref_r)

    print("KERNEL_OK")
</pallas_src>

<mosaic_0001>
module attributes {stable_mosaic.version = 11 : i64} {
  func.func @_mse_partial_kernel(%arg0: i32, %arg1: i32, %arg2: memref<16x128xf32, #tpu.memory_space<vmem>>, %arg3: memref<16x128xf32, #tpu.memory_space<vmem>>, %arg4: memref<8x128xf32, #tpu.memory_space<vmem>>) attributes {dimension_semantics = [#tpu.dimension_semantics<parallel>, #tpu.dimension_semantics<arbitrary>], iteration_bounds = array<i64: 2, 1>, scalar_prefetch = 0 : i64, scratch_operands = 0 : i64, tpu.core_type = #tpu.core_type<tc>, window_params = [{transform_indices = @transform_0, window_bounds = array<i64: 16, 128>}, {transform_indices = @transform_1, window_bounds = array<i64: 16, 128>}, {transform_indices = @transform_2, window_bounds = array<i64: 8, 128>}]} {
    %c0_i32 = arith.constant 0 : i32
    %0 = arith.cmpi eq, %arg1, %c0_i32 : i32
    %1 = arith.extui %0 : i1 to i32
    %c0_i32_0 = arith.constant 0 : i32
    %2 = arith.cmpi ne, %1, %c0_i32_0 : i32
    scf.if %2 {
      %cst = arith.constant 0.000000e+00 : f32
      %15 = vector.broadcast %cst : f32 to vector<8x128xf32>
      %c0_8 = arith.constant 0 : index
      %c0_9 = arith.constant 0 : index
      %16 = vector.load %arg4[%c0_8, %c0_9] : memref<8x128xf32, #tpu.memory_space<vmem>>, vector<8x128xf32>
      tpu.vector_store %arg4[%c0_8, %c0_9], %15 {strides = array<i32>} : memref<8x128xf32, #tpu.memory_space<vmem>>, vector<8x128xf32>,
    } else {
    }
    %c0 = arith.constant 0 : index
    %c0_1 = arith.constant 0 : index
    %3 = vector.load %arg2[%c0, %c0_1] : memref<16x128xf32, #tpu.memory_space<vmem>>, vector<16x128xf32>
    %c0_2 = arith.constant 0 : index
    %c0_3 = arith.constant 0 : index
    %4 = vector.load %arg3[%c0_2, %c0_3] : memref<16x128xf32, #tpu.memory_space<vmem>>, vector<16x128xf32>
    %5 = arith.subf %3, %4 : vector<16x128xf32>
    %6 = arith.mulf %5, %5 : vector<16x128xf32>
    %c1_i32 = arith.constant 1 : i32
    %7 = arith.muli %arg0, %c1_i32 : i32
    %8 = arith.addi %7, %arg1 : i32
    %c1_i32_4 = arith.constant 1 : i32
    %9 = arith.cmpi slt, %8, %c1_i32_4 : i32
    %10 = arith.extui %9 : i1 to i32
    %c0_i32_5 = arith.constant 0 : i32
    %11 = arith.cmpi ne, %10, %c0_i32_5 : i32
    scf.if %11 {
      %c0_8 = arith.constant 0 : index
      %c0_9 = arith.constant 0 : index
      %15 = vector.load %arg4[%c0_8, %c0_9] : memref<8x128xf32, #tpu.memory_space<vmem>>, vector<8x128xf32>
      %16 = vector.shape_cast %6 : vector<16x128xf32> to vector<2x8x128xf32>
      %cst = arith.constant dense<0.000000e+00> : vector<8x128xf32>
      %17 = vector.multi_reduction <add>, %16, %cst [0] : vector<2x8x128xf32> to vector<8x128xf32>
      %18 = arith.addf %15, %17 : vector<8x128xf32>
      %c0_10 = arith.constant 0 : index
      %c0_11 = arith.constant 0 : index
      %19 = vector.load %arg4[%c0_10, %c0_11] : memref<8x128xf32, #tpu.memory_space<vmem>>, vector<8x128xf32>
      tpu.vector_store %arg4[%c0_10, %c0_11], %18 {strides = array<i32>} : memref<8x128xf32, #tpu.memory_space<vmem>>, vector<8x128xf32>,
    } else {
    }
    %c1_i32_6 = arith.constant 1 : i32
    %12 = arith.cmpi sge, %8, %c1_i32_6 : i32
    %13 = arith.extui %12 : i1 to i32
    %c0_i32_7 = arith.constant 0 : i32
    %14 = arith.cmpi ne, %13, %c0_i32_7 : i32
    scf.if %14 {
      %15 = tpu.iota {dimensions = array<i32: 0>} : vector<16x128xi32>
      %c16_i32 = arith.constant 16 : i32
      %16 = arith.muli %8, %c16_i32 : i32
      %17 = vector.broadcast %16 : i32 to vector<16x128xi32>
      %18 = arith.addi %15, %17 : vector<16x128xi32>
      %c16_i32_8 = arith.constant 16 : i32
      %19 = vector.broadcast %c16_i32_8 : i32 to vector<16x128xi32>
      %20 = arith.cmpi slt, %18, %19 : vector<16x128xi32>
      %cst = arith.constant 0.000000e+00 : f32
      %21 = vector.broadcast %cst : f32 to vector<16x128xf32>
      %22 = arith.select %20, %6, %21 : vector<16x128xi1>, vector<16x128xf32>
      %c0_9 = arith.constant 0 : index
      %c0_10 = arith.constant 0 : index
      %23 = vector.load %arg4[%c0_9, %c0_10] : memref<8x128xf32, #tpu.memory_space<vmem>>, vector<8x128xf32>
      %24 = vector.shape_cast %22 : vector<16x128xf32> to vector<2x8x128xf32>
      %cst_11 = arith.constant dense<0.000000e+00> : vector<8x128xf32>
      %25 = vector.multi_reduction <add>, %24, %cst_11 [0] : vector<2x8x128xf32> to vector<8x128xf32>
      %26 = arith.addf %23, %25 : vector<8x128xf32>
      %c0_12 = arith.constant 0 : index
      %c0_13 = arith.constant 0 : index
      %27 = vector.load %arg4[%c0_12, %c0_13] : memref<8x128xf32, #tpu.memory_space<vmem>>, vector<8x128xf32>
      tpu.vector_store %arg4[%c0_12, %c0_13], %26 {strides = array<i32>} : memref<8x128xf32, #tpu.memory_space<vmem>>, vector<8x128xf32>,
    } else {
    }
    return
  }
  func.func @transform_0(%arg0: i32, %arg1: i32) -> (i32, i32) {
    %c1_i32 = arith.constant 1 : i32
    %0 = arith.muli %arg0, %c1_i32 : i32
    %1 = arith.addi %0, %arg1 : i32
    %c0_i32 = arith.constant 0 : i32
    %2 = arith.minsi %1, %c0_i32 : i32
    %c0_i32_0 = arith.constant 0 : i32
    %c0_i32_1 = arith.constant 0 : i32
    return %2, %c0_i32_0 : i32, i32
  }
  func.func @transform_1(%arg0: i32, %arg1: i32) -> (i32, i32) {
    %c1_i32 = arith.constant 1 : i32
    %0 = arith.muli %arg0, %c1_i32 : i32
    %1 = arith.addi %0, %arg1 : i32
    %c0_i32 = arith.constant 0 : i32
    %2 = arith.minsi %1, %c0_i32 : i32
    %c0_i32_0 = arith.constant 0 : i32
    %c0_i32_1 = arith.constant 0 : i32
    return %2, %c0_i32_0 : i32, i32
  }
  func.func @transform_2(%arg0: i32, %arg1: i32) -> (i32, i32) {
    %c0_i32 = arith.constant 0 : i32
    %c0_i32_0 = arith.constant 0 : i32
    return %c0_i32, %arg0 : i32, i32
  }
}

</mosaic_0001>

<bundles_post_ra>
// kernel: tpu_custom_call.1
= control target key start
LH: loop header
LB: loop body
LE: loop exit
PB: predicated region body
PF: predicated region fallthrough
CT: control target
= control target key end

     0   :  { %7 = vsyncpa [#allocation3], 0  ;;  %s890_s0 = inlined_call_operand.hbm [shape: f32[16,128], index: 0, kind: input, shape index: {}]   ;;  %s891_s1 = inlined_call_operand.hbm [shape: f32[16,128], index: 1, kind: input, shape index: {}]   ;;  %s892_s2 = inlined_call_operand.hbm [shape: f32[8,256], index: 2, kind: output, shape index: {}]  }
   0x1   :  { %9 = vsyncpa [#allocation3 + $0x1], 0 }
   0x2   :  { %10 = vsyncpa [#allocation6], 0 }
   0x3   :  { %12 = vsyncpa [#allocation6 + $0x1], 0 }
   0x4   :  { %13 = vsyncpa [#allocation4], 0 }
   0x5   :  { %15 = vsyncpa [#allocation4 + $0x1], 0  ;;  %s697_s9 = smov 0   ;;  %s699_s10 = smov 0  }
   0x6   :  { %s701_s11 = smov 0   ;;  %s703_s12 = smov 0  }
   0x7   :  { %s705_s13 = smov 0   ;;  %s707_s14 = smov 0  }
   0x8   :  { %s709_s15 = smov 0   ;;  %s711_s16 = smov 0  }
   0x9 LB: > { %s396_s17 = sadd.s32 4294967295, %s674_s16   ;;  %s397_s18 = sadd.s32 4294967294, %s674_s16   ;;  %s674_s16 = sphi %s711_s16, %s21_s16   ;;  %s670_s15 = sphi %s709_s15, %s911_s15   ;;  %s666_s14 = sphi %s707_s14, %s910_s14   ;;  %s662_s13 = sphi %s705_s13, %s880_s13   ;;  %s658_s12 = sphi %s703_s12, %s909_s12   ;;  %s654_s11 = sphi %s701_s11, %s908_s11   ;;  %s650_s10 = sphi %s699_s10, %s907_s10   ;;  %s646_s9 = sphi %s697_s9, %s906_s9  }
   0xa   : > { %s33_s19 = sadd.s32 1, %s670_s15  ;;  %p643_p1 = scmp.ne.s32.totalorder %s662_s13, 0 }
   0xb   : > { %p35_p0 = scmp.ge.s32.totalorder %s33_s19, 2  ;;  %p54_p2 = scmp.eq.s32.totalorder %s674_s16, 0 }
   0xc   : > { %p59_p3 = scmp.ne.s32.totalorder %s662_s13, %s658_s12  ;;  %p60_p5 = scmp.eq.s32.totalorder %s396_s17, 0 }
   0xd   : > { %s913_s19 = smov (%p35_p0, %s33_s19), 0  ;;  %p743_p4 = por %p643_p1, %p54_p2 }
   0xe   : > { %p747_p6 = por %p60_p5, %p59_p3  ;;  %s101_s22 = ssub.s32 %s670_s15, %s913_s19 }
   0xf   : > { %p102_p7 = scmp.eq.s32.totalorder %s101_s22, 0  ;;  %s104_s23 = sadd.s32 1, %s654_s11 }
  0x10   : > { %s896_s21 = scalar_select %p747_p6, 1, 0 }
  0x11   : > { %s755_s24 = scalar_select %p102_p7, %s654_s11, %s104_s23  }
  0x12   : > { %p114_p8 = scmp.ne.s32.totalorder %s654_s11, %s650_s10  ;;  %p115_p9 = scmp.eq.s32.totalorder %s396_s17, 1 }
  0x13   : > { %p120_p10 = scmp.ne.s32.totalorder %s650_s10, %s646_s9  ;;  %p121_p11 = scmp.eq.s32.totalorder %s397_s18, 1 }
  0x14   : > { %p761_p12 = por %p115_p9, %p114_p8  ;;  %p436_p1 = scmp.lt.s32.totalorder %s674_s16, 2 }
  0x15   : > { %p766_p0 = por %p121_p11, %p120_p10  ;;  %s676_s27 = smov [#allocation2]  }
  0x16   : > { %s897_s25 = scalar_select %p761_p12, 1, 0 }
  0x17   : > { %s898_s26 = scalar_select %p766_p0, 1, 0 }
  0x18   : > { %s155_s28 = sshll.u32 %s676_s27, 4  ;;  %p773_p2 = pnand %p436_p1, %p743_p4  ;;  %s156_s28 = int_to_ptr.vmem [resolvable:$true] %s155_s28 }
  0x19   : > { %s513_s4 = scalar_lea.hbm %s890_s0, 256 }
  0x1a   : > { %p514_p3 = scmp.ne.s32.totalorder %s890_s0, %s513_s4  ;;  %p515_p5 = pneg %p773_p2 }
  0x1b   : > { %p520_p8 = scmp.lt.s32.totalorder %s513_s4, %s513_s4 }
  0x1c   : > { %p516_p7 = pnand %p515_p5, %p514_p3 }
  0x1e   : > { %p517_p4 = pneg %p516_p7 }
  0x20   : > { %p522_p9 = pnand %p520_p8, %p517_p4 }
  0x22   : > { %525 = shalt.err (!%p522_p9)
}
  0x23   : > { %s526_s7 = scalar_lea.vmem %s156_s28, 256  ;;  %s533_s8 = scalar_lea.vmem %s156_s28, 512 }
  0x24   : > { %p527_p10 = scmp.ne.s32.totalorder %s156_s28, %s526_s7  ;;  %p534_p13 = scmp.lt.s32.totalorder %s156_s28, %s156_s28 }
  0x25   : > { %p535_p0 = scmp.lt.s32.totalorder %s533_s8, %s526_s7 }
  0x26   : > { %p529_p11 = pnand %p527_p10, %p515_p5 }
  0x27   : > { %p536_p12 = por %p535_p0, %p534_p13 }
  0x28   : > { %p530_p1 = pneg %p529_p11 }
  0x2a   : > { %p537_p6 = pnand %p536_p12, %p530_p1 }
  0x2c   : > { %540 = shalt.err (!%p537_p6)
}
  0x2d   : > { %s677_s12 = smov 128   ;;  %s678_s17 = smov 8  }
  0x2e   : > { %428 = dma.hbm_to_vmem [thread:$0]  (!%p773_p2), %s890_s0, 256, %s156_s28, [#allocation3], %s677_s12, %s677_s12, %s678_s17  }
  0x2f   : > { %p406_p3 = scmp.ge.s32.totalorder %s674_s16, 1  ;;  %p187_p7 = scmp.lt.s32.totalorder %s674_s16, 3 }
  0x30   : > { %s679_s23 = smov [#allocation5]   ;;  %s541_s4 = scalar_lea.hbm %s891_s1, 256 }
  0x31   : > { %p798_p4 = pnand %p406_p3, %p187_p7  ;;  %s179_s27 = sshll.u32 %s679_s23, 4  ;;  %s180_s27 = int_to_ptr.vmem [resolvable:$true] %s179_s27 }
  0x32   : > { %p542_p6 = scmp.ne.s32.totalorder %s891_s1, %s541_s4  ;;  %p548_p0 = scmp.lt.s32.totalorder %s541_s4, %s541_s4 }
  0x33   : > { %s900_s22 = scalar_select %p798_p4, 1, 0 }
  0x34   : > { %p544_p12 = pnand %p542_p6, %p515_p5 }
  0x36   : > { %p545_p13 = pneg %p544_p12 }
  0x38   : > { %p550_p8 = pnand %p548_p0, %p545_p13 }
  0x3a   : > { %553 = shalt.err (!%p550_p8)
}
  0x3b   : > { %s554_s28 = scalar_lea.vmem %s180_s27, 256  ;;  %s561_s7 = scalar_lea.vmem %s180_s27, 512 }
  0x3c   : > { %p555_p9 = scmp.ne.s32.totalorder %s180_s27, %s554_s28  ;;  %p562_p1 = scmp.lt.s32.totalorder %s180_s27, %s180_s27 }
  0x3d   : > { %p563_p3 = scmp.lt.s32.totalorder %s561_s7, %s554_s28 }
  0x3e   : > { %p557_p10 = pnand %p555_p9, %p515_p5 }
  0x3f   : > { %p564_p7 = por %p563_p3, %p562_p1 }
  0x40   : > { %p558_p11 = pneg %p557_p10 }
  0x42   : > { %p565_p4 = pnand %p564_p7, %p558_p11 }
  0x44   : > { %568 = shalt.err (!%p565_p4)
}
  0x45   : > { %431 = dma.hbm_to_vmem [thread:$0]  (!%p773_p2), %s891_s1, 256, %s180_s27, [#allocation6], %s677_s12, %s677_s12, %s678_s17  }
  0x46   : > { %p901_p6 = scmp.ne.s32.totalorder %s900_s22, 0 }
  0x47   : > { %s193_s20 = sand.u32 (!%p901_p6), 1, %s662_s13   ;;  %p902_p5 = scmp.ne.s32.totalorder (!%p901_p6), %s896_s21, 0 }
  0x48   : > { %191 = sbr.rel (%p901_p6) target bundleno = 140 (0x8c), region = 28  ;;  %s407_s23 = sshll.u32 (!%p901_p6), %s193_s20, 4 }
  0x49   : > { %s194_s30 = scalar_lea.sflag (!%p901_p6), [#allocation3], %s193_s20  ;;  %s197_s3 = scalar_lea.vmem (!%p901_p6), [#allocation2], %s407_s23 }
  0x4d   : > { %632 = dma.done.wait (%p902_p5), %s194_s30, 256  }
  0x4e   : > { %634 = vsyncadd (%p902_p5), %s194_s30, 4294967040  ;;  %s203_s29 = scalar_lea.sflag [#allocation6], %s193_s20  ;;  %s206_s4 = scalar_lea.vmem [#allocation5], %s407_s23 }
  0x4f   : > { %636 = dma.done.wait (%p902_p5), %s203_s29, 256  }
  0x50   : > { %638 = vsyncadd (%p902_p5), %s203_s29, 4294967040  ;;  %s229_s12 = sand.u32 1, %s650_s10   ;;  %v680_v0 = vmov 0.0   ;;  %v245_v1 = vld [vmem:[%s197_s3] sm:$0xff]  ;;  %v246_v2 = vld [vmem:[%s197_s3 + $0x8] sm:$0xff]  ;;  %p410_p2 = scmp.ge.s32.totalorder %s666_s14, 1 }
  0x51   : > { %s409_s17 = sshll.u32 %s229_s12, 3  ;;  %v247_v3 = vld [vmem:[%s206_s4] sm:$0xff]  ;;  %v248_v4 = vld [vmem:[%s206_s4 + $0x8] sm:$0xff] }
  0x52   : > { %s833_s22 = scalar_lea.vmem [#allocation7], %s409_s17  ;;  %v249_v5 = vsub.f32 %v245_v1, %v247_v3  ;;  %v250_v6 = vsub.f32 %v246_v2, %v248_v4  ;;  %257 = sbr.rel (%p410_p2) target bundleno = 94 (0x5e), region = 44 }
  0x53   : > { %244 = vst [vmem:[%s833_s22] sm:$0xff] %v680_v0 }
  0x54   : > { %v251_v7 = vmul.f32 %v249_v5, %v249_v5  ;;  %v252_v8 = vmul.f32 %v250_v6, %v250_v6 }
  0x57   : > { %v259_v10 = vadd.f32 %v252_v8, %v251_v7 }
  0x5a   : > { %v258_v9 = vld [vmem:[%s833_s22] sm:$0xff] }
  0x5b   : > { %v260_v11 = vadd.f32 %v259_v10, %v258_v9 }
  0x5d   : > { %261 = vst [vmem:[%s833_s22] sm:$0xff] %v260_v11 }
  0x5e PF: > { %p411_p4 = scmp.lt.s32.totalorder %s666_s14, 1 }
  0x5f   : > { %s412_s21 = sshll.u32 (!%p411_p4), %s666_s14, 4 }
  0x60   : > { %265 = sbr.rel (%p411_p4) target bundleno = 116 (0x74), region = 48 }
  0x65   : > { %v266_v12 = vlaneseq  ;;  %v270_v13 = vstv %s412_s21  ;;  %v277_v20 = vld [vmem:[%s833_s22] sm:$0xff] }
  0x67   : > { %v267_v14 = vshrl.u32 %v266_v12, 7 }
  0x69   : > { %v268_v15 = vadd.s32 8, %v267_v14  ;;  %v271_v16 = vadd.s32 %v270_v13, %v267_v14 }
  0x6b   : > { %v272_v17 = vadd.s32 %v270_v13, %v268_v15  ;;  %vm273_vm0 = vcmp.lt.s32.totalorder %v271_v16, 16 }
  0x6c   : > { %v275_v18 = vsel %vm273_vm0, %v251_v7, 0.0 }
  0x6d   : > { %vm274_vm1 = vcmp.lt.s32.totalorder %v272_v17, 16 }
  0x6e   : > { %v276_v19 = vsel %vm274_vm1, %v252_v8, 0.0 }
  0x6f   : > { %v278_v21 = vadd.f32 %v276_v19, %v275_v18 }
  0x71   : > { %v279_v22 = vadd.f32 %v278_v21, %v277_v20 }
  0x73   : > { %280 = vst [vmem:[%s833_s22] sm:$0xff] %v279_v22 }
  0x74 PF: > { %s414_s27 = sshll.u32 %s666_s14, 7  ;;  %s295_s7 = sshll.u32 %s833_s22, 4  ;;  %s296_s7 = int_to_ptr.vmem [resolvable:$true] %s295_s7 }
  0x75   : > { %s293_s28 = scalar_lea.hbm %s892_s2, %s414_s27  ;;  %s282_s8 = scalar_lea.sflag [#allocation4], %s229_s12 }
  0x76   : > { %s569_s18 = scalar_lea.vmem %s296_s7, 128  ;;  %p903_p13 = scmp.ne.s32.totalorder %s897_s25, 0 }
  0x77   : > { %p570_p12 = scmp.ne.s32.totalorder %s296_s7, %s569_s18  ;;  %s681_s20 = smov [#allocation7]  }
  0x78   : > { %s573_s23 = sshll.u32 %s681_s20, 4  ;;  %s574_s23 = int_to_ptr.vmem [resolvable:$false] %s573_s23 }
  0x79   : > { %p571_p0 = pnand %p570_p12, %p903_p13  ;;  %s575_s30 = scalar_lea.vmem %s574_s23, 256 }
  0x7a   : > { %p576_p9 = scmp.lt.s32.totalorder %s296_s7, %s574_s23  ;;  %p577_p10 = scmp.lt.s32.totalorder %s575_s30, %s569_s18 }
  0x7b   : > { %p572_p8 = pneg %p571_p0 }
  0x7c   : > { %p578_p11 = por %p577_p10, %p576_p9 }
  0x7e   : > { %p579_p1 = pnand %p578_p11, %p572_p8 }
  0x80   : > { %582 = shalt.err (!%p579_p1)
}
  0x81   : > { %s583_s14 = scalar_lea.hbm %s293_s28, 128  ;;  %s587_s4 = scalar_lea.hbm %s892_s2, 256 }
  0x82   : > { %p584_p3 = scmp.ne.s32.totalorder %s293_s28, %s583_s14  ;;  %p588_p5 = scmp.lt.s32.totalorder %s293_s28, %s892_s2 }
  0x83   : > { %p589_p2 = scmp.lt.s32.totalorder %s587_s4, %s583_s14 }
  0x84   : > { %p585_p7 = pnand %p584_p3, %p903_p13 }
  0x85   : > { %p590_p4 = por %p589_p2, %p588_p5 }
  0x86   : > { %p586_p6 = pneg %p585_p7 }
  0x88   : > { %p591_p12 = pnand %p590_p4, %p586_p6 }
  0x8a   : > { %594 = shalt.err (!%p591_p12)
}
  0x8b   : > { %423 = dma.vmem_to_hbm [thread:$0]  (%p903_p13), %s296_s7, 128, %s293_s28, %s282_s8  }
  0x8c PF: > { %s307_s22 = sand.u32 1, %s646_s9   ;;  %p904_p0 = scmp.ne.s32.totalorder %s898_s26, 0 }
  0x8d   : > { %p905_p8 = scmp.ge.s32.totalorder %s674_s16, 2  ;;  %s308_s21 = scalar_lea.sflag [#allocation4], %s307_s22 }
  0x8f   : > { %p433_p9 = pnand %p905_p8, %p904_p0 }
  0x91   : > { %p434_p10 = pneg %p433_p9 }
  0x93   : > { %640 = dma.done.wait (%p434_p10), %s308_s21, 128  }
  0x94   : > { %642 = vsyncadd (%p434_p10), %s308_s21, 4294967168  ;;  %s21_s16 = sadd.s32 1, %s674_s16   ;;  %s906_s9 = smov %s650_s10 }
  0x95   : > { %p18_p11 = scmp.ge.s32.totalorder %s21_s16, 4   ;;  %s907_s10 = smov %s654_s11 }
  0x96   : > { %s908_s11 = smov %s755_s24  ;;  %s909_s12 = smov %s662_s13 }
  0x97   : > { %s880_s13 = smov 0   ;;  %s910_s14 = smov %s670_s15 }
  0x98   : > { %s911_s15 = smov %s913_s19  ;;  %20 = sbr.rel (!%p18_p11) target bundleno = 9 (0x9), region = 98 }
  0x9d   :  { %313 = vsyncpa [#allocation3], 1 }
  0x9e   :  { %315 = vsyncpa [#allocation3 + $0x1], 1 }
  0x9f   :  { %316 = vsyncpa [#allocation6], 1 }
  0xa0   :  { %318 = vsyncpa [#allocation6 + $0x1], 1 }
  0xa1   :  { %319 = vsyncpa [#allocation4], 1 }
  0xa2   :  { %321 = vsyncpa [#allocation4 + $0x1], 1 }

</bundles_post_ra>
